<compile_context>
chip_gen: v7x
topology: tpu7x:2x2x1
jax: 0.10.0
libtpu: 0.0.40
codegen_flags: <defaults>
</compile_context>

<pallas_src>
import jax
import jax.numpy as jnp
from jax.experimental import pallas as pl
from jax.experimental.pallas import tpu as pltpu


def _round_up(x, m):
    return ((x + m - 1) // m) * m


def _vmem_capacity_bytes():
    """Physical VMEM of the current chip (fallback: v7x's 64 MiB per TC)."""
    try:
        return int(pltpu.get_tpu_info().vmem_capacity_bytes)
    except Exception:
        return 64 << 20


# ---------------------------------------------------------------------------
# Kernels.  Inputs arrive in their HBM dtype; casting to the matmul dtype
# (taken from the weight refs) happens here, and the residual add is f32.
# ---------------------------------------------------------------------------
def _dense_kernel(anchor_ref, other_ref, p_ref, out_ref):
    b = anchor_ref[...].astype(jnp.float32)                       # (tm, E)
    delta = other_ref[...].astype(jnp.float32) - b                # (tm, E)
    proj = jnp.dot(delta.astype(p_ref.dtype), p_ref[...],
                   preferred_element_type=jnp.float32)            # (tm, E)
    out_ref[...] = (b + proj).astype(out_ref.dtype)


def _factored_kernel(anchor_ref, other_ref, wr_ref, wrt_ref, out_ref):
    b = anchor_ref[...].astype(jnp.float32)                       # (tm, E)
    delta = other_ref[...].astype(jnp.float32) - b                # (tm, E)
    tmp = jnp.dot(delta.astype(wr_ref.dtype), wr_ref[...],
                  preferred_element_type=jnp.float32)             # (tm, r_pad)
    proj = jnp.dot(tmp.astype(wrt_ref.dtype), wrt_ref[...],
                   preferred_element_type=jnp.float32)            # (tm, E)
    out_ref[...] = (b + proj).astype(out_ref.dtype)


# ---------------------------------------------------------------------------
# Wrapper.
# ---------------------------------------------------------------------------
def rotated_space_intervention(base, source, w, interchange_dim, *, tm=None,
                               compute_dtype=None):
    """base/source: (..., E); w: (E, E) orthogonal rotation.

    The first `interchange_dim` rotated coordinates of `base` are replaced by
    those of `source`, then rotated back (exact collapse assumes W W^T = I).
    `compute_dtype` controls the MXU matmul dtype; defaults to bf16 only for
    large E (compute-bound regime) and f32 otherwise (mem-bound, free accuracy).
    """
    orig_shape = base.shape
    orig_dtype = base.dtype
    E = orig_shape[-1]
    d = int(interchange_dim)
    d = max(0, min(d, E))

    # -- short-circuits (the module default is interchange_dim == embed_dim) --
    if d == 0:
        return base
    if d == E:
        return source.astype(orig_dtype)

    if compute_dtype is None:
        compute_dtype = (jnp.bfloat16
                         if (E >= 1024 or orig_dtype == jnp.bfloat16)
                         else jnp.float32)
    compute_dtype = jnp.dtype(compute_dtype)

    # -- pick the smaller-rank side of the swap --------------------------------
    base2d = base.reshape(-1, E)
    src2d = source.reshape(-1, E)
    w32 = w.astype(jnp.float32)
    if d <= E - d:
        anchor2d, other2d = base2d, src2d
        w_cols = w32[:, :d]          # (E, d)
        rank = d
    else:
        # out = source - (source-base) @ W_r W_r^T,  W_r = W[:, d:]
        anchor2d, other2d = src2d, base2d
        w_cols = w32[:, d:]          # (E, E-d)
        rank = E - d

    # -- weight precompute (f32, once; amortized over all rows) ----------------
    r_pad = _round_up(max(rank, 1), 128)
    use_factored = (2 * r_pad) < E
    if use_factored:
        w_cols_p = jnp.pad(w_cols, ((0, 0), (0, r_pad - rank)))
        weights = (w_cols_p.astype(compute_dtype),
                   w_cols_p.T.astype(compute_dtype))
        weight_block_shapes = [(E, r_pad), (r_pad, E)]
        weight_bytes = 2 * E * r_pad * compute_dtype.itemsize
        kernel = _factored_kernel
    else:
        p = jnp.matmul(w_cols, w_cols.T, precision=jax.lax.Precision.HIGHEST)
        weights = (p.astype(compute_dtype),)
        weight_block_shapes = [(E, E)]
        weight_bytes = E * E * compute_dtype.itemsize
        kernel = _dense_kernel

    # -- row tiling / VMEM budgeting -------------------------------------------
    N = base2d.shape[0]
    n_rows8 = _round_up(max(N, 1), 8)
    in_item = jnp.dtype(orig_dtype).itemsize
    out_item = jnp.dtype(orig_dtype).itemsize

    vmem_cap = _vmem_capacity_bytes()
    budget = (vmem_cap * 4) // 5                     # ~80% of physical VMEM
    # Per-row bytes: 2 double-buffered inputs + double-buffered output
    # + f32 intermediates (anchor, delta, proj) [+ factored tmp].
    per_row = E * (4 * in_item + 2 * out_item + 3 * 4)
    if use_factored:
        per_row += r_pad * 4
    avail = max(budget - weight_bytes - (4 << 20), per_row * 8)
    tm_auto = max(8, min(1024, (avail // per_row) // 8 * 8))

    if tm is not None:
        tm_eff = max(8, min(_round_up(int(tm), 8), n_rows8))
    else:
        tm_eff = min(tm_auto, n_rows8)
        # v7x megacore: prefer >= 2 grid steps so both TensorCores get work.
        if n_rows8 >= 16 and tm_eff >= n_rows8:
            tm_eff = _round_up((n_rows8 + 1) // 2, 8)

    n_pad = _round_up(N, tm_eff)
    if n_pad != N:
        anchor2d = jnp.pad(anchor2d, ((0, n_pad - N), (0, 0)))
        other2d = jnp.pad(other2d, ((0, n_pad - N), (0, 0)))

    # Always set the scoped limit (v5e defaults to 16 MiB) but never above
    # ~90% of the chip's physical VMEM (v7x: 64 MiB per TensorCore).
    vmem_needed = 2 * weight_bytes + tm_eff * per_row + (2 << 20)
    vmem_limit = int(min(max(vmem_needed, 16 << 20), (vmem_cap * 9) // 10))

    row_spec = pl.BlockSpec((tm_eff, E), lambda i: (i, 0))

    def _launch(single_buffer_weights):
        if single_buffer_weights:
            wspecs = [pl.BlockSpec(s, lambda i: (0, 0),
                                   pipeline_mode=pl.Buffered(1))
                      for s in weight_block_shapes]
        else:
            wspecs = [pl.BlockSpec(s, lambda i: (0, 0))
                      for s in weight_block_shapes]
        return pl.pallas_call(
            kernel,
            out_shape=jax.ShapeDtypeStruct((n_pad, E), orig_dtype),
            grid_spec=pltpu.PrefetchScalarGridSpec(
                num_scalar_prefetch=0,
                grid=(n_pad // tm_eff,),
                in_specs=[row_spec, row_spec] + wspecs,
                out_specs=pl.BlockSpec((tm_eff, E), lambda i: (i, 0)),
            ),
            compiler_params=pltpu.CompilerParams(
                dimension_semantics=("parallel",),
                vmem_limit_bytes=vmem_limit,
            ),
        )(anchor2d, other2d, *weights)

    try:
        out = _launch(True)          # single-buffered resident weights
    except Exception:
        out = _launch(False)         # fallback: default double buffering

    if n_pad != N:
        out = out[:N]
    return out.reshape(orig_shape)


# ---------------------------------------------------------------------------
# Reference (faithful rotate -> concatenate-swap -> rotate-back path).
# ---------------------------------------------------------------------------
def _reference(base, source, w, interchange_dim):
    d = interchange_dim
    rb = base @ w
    rs = source @ w
    rb = jnp.concatenate([rs[..., :d], rb[..., d:]], axis=-1)
    return (rb @ w.T).astype(base.dtype)


if __name__ == "__main__":
    key = jax.random.PRNGKey(0)

    def make_orthogonal(k, n):
        raw = jax.random.normal(k, (n, n), dtype=jnp.float32)
        q, _ = jnp.linalg.qr(raw)
        # Newton-Schulz polish so W is orthogonal to f32 rounding, matching the
        # exact-orthogonality guarantee of the torch parametrization.
        for _ in range(2):
            qtq = jnp.matmul(q.T, q, precision=jax.lax.Precision.HIGHEST)
            q = 1.5 * q - 0.5 * jnp.matmul(q, qtq,
                                           precision=jax.lax.Precision.HIGHEST)
        return q

    def check(batch, seq, E, d, k):
        kb, ks, kw = jax.random.split(k, 3)
        base = jax.random.normal(kb, (batch, seq, E), dtype=jnp.float32)
        source = jax.random.normal(ks, (batch, seq, E), dtype=jnp.float32)
        w = make_orthogonal(kw, E)
        out = jax.block_until_ready(
            rotated_space_intervention(base, source, w, d))
        ref = _reference(base, source, w, d)
        assert out.shape == base.shape and out.dtype == base.dtype
        err = float(jnp.max(jnp.abs(out - ref)))
        assert jnp.allclose(out, ref, atol=2e-3, rtol=2e-3), (E, d, err)

    k1, k2, k3 = jax.random.split(key, 3)
    check(2, 8, 128, 64, k1)       # dense-P path
    check(2, 4, 512, 32, k2)       # factored low-rank path (project first d)
    check(2, 4, 512, 480, k3)      # factored complement path (project last E-d)

    # Short-circuit paths (module default: interchange_dim == embed_dim).
    kb, ks, kw = jax.random.split(k1, 3)
    base = jax.random.normal(kb, (2, 8, 128), dtype=jnp.float32)
    source = jax.random.normal(ks, (2, 8, 128), dtype=jnp.float32)
    w = make_orthogonal(kw, 128)
    assert jnp.allclose(rotated_space_intervention(base, source, w, 128), source)
    assert jnp.allclose(rotated_space_intervention(base, source, w, 0), base)

    print("KERNEL_OK")
</pallas_src>

<mosaic_0001>
module attributes {stable_mosaic.version = 11 : i64} {
  func.func @_dense_kernel(%arg0: i32, %arg1: memref<8x128xf32, #tpu.memory_space<vmem>>, %arg2: memref<8x128xf32, #tpu.memory_space<vmem>>, %arg3: memref<128x128xf32, #tpu.memory_space<vmem>>, %arg4: memref<8x128xf32, #tpu.memory_space<vmem>>) attributes {dimension_semantics = [#tpu.dimension_semantics<parallel>], iteration_bounds = array<i64: 2>, scalar_prefetch = 0 : i64, scratch_operands = 0 : i64, tpu.core_type = #tpu.core_type<tc>, window_params = [{transform_indices = @transform_0, window_bounds = array<i64: 8, 128>}, {transform_indices = @transform_1, window_bounds = array<i64: 8, 128>}, {pipeline_mode = #tpu.pipeline_mode<synchronous>, transform_indices = @transform_2, window_bounds = array<i64: 128, 128>}, {transform_indices = @transform_3, window_bounds = array<i64: 8, 128>}]} {
    %c0 = arith.constant 0 : index
    %c0_0 = arith.constant 0 : index
    %0 = vector.load %arg1[%c0, %c0_0] : memref<8x128xf32, #tpu.memory_space<vmem>>, vector<8x128xf32>
    %c0_1 = arith.constant 0 : index
    %c0_2 = arith.constant 0 : index
    %1 = vector.load %arg2[%c0_1, %c0_2] : memref<8x128xf32, #tpu.memory_space<vmem>>, vector<8x128xf32>
    %2 = arith.subf %1, %0 : vector<8x128xf32>
    %c0_3 = arith.constant 0 : index
    %c0_4 = arith.constant 0 : index
    %3 = vector.load %arg3[%c0_3, %c0_4] : memref<128x128xf32, #tpu.memory_space<vmem>>, vector<128x128xf32>
    %cst = arith.constant dense<0.000000e+00> : vector<8x128xf32>
    %4 = tpu.matmul %2, %3, %cst {dimension_numbers = #tpu.dot_dimension_numbers<[1], [0], [0], [1], [0, 0, 1, 1], [], []>} : vector<8x128xf32>, vector<128x128xf32>, vector<8x128xf32> -> vector<8x128xf32>
    %5 = arith.addf %0, %4 : vector<8x128xf32>
    %c0_5 = arith.constant 0 : index
    %c0_6 = arith.constant 0 : index
    %6 = vector.load %arg4[%c0_5, %c0_6] : memref<8x128xf32, #tpu.memory_space<vmem>>, vector<8x128xf32>
    tpu.vector_store %arg4[%c0_5, %c0_6], %5 {strides = array<i32>} : memref<8x128xf32, #tpu.memory_space<vmem>>, vector<8x128xf32>,
    return
  }
  func.func @transform_0(%arg0: i32) -> (i32, i32) {
    %c0_i32 = arith.constant 0 : i32
    %c0_i32_0 = arith.constant 0 : i32
    return %arg0, %c0_i32 : i32, i32
  }
  func.func @transform_1(%arg0: i32) -> (i32, i32) {
    %c0_i32 = arith.constant 0 : i32
    %c0_i32_0 = arith.constant 0 : i32
    return %arg0, %c0_i32 : i32, i32
  }
  func.func @transform_2(%arg0: i32) -> (i32, i32) {
    %c0_i32 = arith.constant 0 : i32
    %c0_i32_0 = arith.constant 0 : i32
    %c0_i32_1 = arith.constant 0 : i32
    return %c0_i32, %c0_i32_0 : i32, i32
  }
  func.func @transform_3(%arg0: i32) -> (i32, i32) {
    %c0_i32 = arith.constant 0 : i32
    %c0_i32_0 = arith.constant 0 : i32
    return %arg0, %c0_i32 : i32, i32
  }
}

module attributes {stable_mosaic.version = 11 : i64} {
  func.func @_dense_kernel(%arg0: i32, %arg1: memref<8x128xf32, #tpu.memory_space<vmem>>, %arg2: memref<8x128xf32, #tpu.memory_space<vmem>>, %arg3: memref<128x128xf32, #tpu.memory_space<vmem>>, %arg4: memref<8x128xf32, #tpu.memory_space<vmem>>) attributes {dimension_semantics = [#tpu.dimension_semantics<parallel>], iteration_bounds = array<i64: 2>, scalar_prefetch = 0 : i64, scratch_operands = 0 : i64, tpu.core_type = #tpu.core_type<tc>, window_params = [{transform_indices = @transform_0, window_bounds = array<i64: 8, 128>}, {transform_indices = @transform_1, window_bounds = array<i64: 8, 128>}, {pipeline_mode = #tpu.pipeline_mode<synchronous>, transform_indices = @transform_2, window_bounds = array<i64: 128, 128>}, {transform_indices = @transform_3, window_bounds = array<i64: 8, 128>}]} {
    %c0 = arith.constant 0 : index
    %c0_0 = arith.constant 0 : index
    %0 = vector.load %arg1[%c0, %c0_0] : memref<8x128xf32, #tpu.memory_space<vmem>>, vector<8x128xf32>
    %c0_1 = arith.constant 0 : index
    %c0_2 = arith.constant 0 : index
    %1 = vector.load %arg2[%c0_1, %c0_2] : memref<8x128xf32, #tpu.memory_space<vmem>>, vector<8x128xf32>
    %2 = arith.subf %1, %0 : vector<8x128xf32>
    %c0_3 = arith.constant 0 : index
    %c0_4 = arith.constant 0 : index
    %3 = vector.load %arg3[%c0_3, %c0_4] : memref<128x128xf32, #tpu.memory_space<vmem>>, vector<128x128xf32>
    %cst = arith.constant dense<0.000000e+00> : vector<8x128xf32>
    %4 = tpu.matmul %2, %3, %cst {dimension_numbers = #tpu.dot_dimension_numbers<[1], [0], [0], [1], [0, 0, 1, 1], [], []>} : vector<8x128xf32>, vector<128x128xf32>, vector<8x128xf32> -> vector<8x128xf32>
    %5 = arith.addf %0, %4 : vector<8x128xf32>
    %c0_5 = arith.constant 0 : index
    %c0_6 = arith.constant 0 : index
    %6 = vector.load %arg4[%c0_5, %c0_6] : memref<8x128xf32, #tpu.memory_space<vmem>>, vector<8x128xf32>
    tpu.vector_store %arg4[%c0_5, %c0_6], %5 {strides = array<i32>} : memref<8x128xf32, #tpu.memory_space<vmem>>, vector<8x128xf32>,
    return
  }
  func.func @transform_0(%arg0: i32) -> (i32, i32) {
    %c0_i32 = arith.constant 0 : i32
    %c0_i32_0 = arith.constant 0 : i32
    return %arg0, %c0_i32 : i32, i32
  }
  func.func @transform_1(%arg0: i32) -> (i32, i32) {
    %c0_i32 = arith.constant 0 : i32
    %c0_i32_0 = arith.constant 0 : i32
    return %arg0, %c0_i32 : i32, i32
  }
  func.func @transform_2(%arg0: i32) -> (i32, i32) {
    %c0_i32 = arith.constant 0 : i32
    %c0_i32_0 = arith.constant 0 : i32
    %c0_i32_1 = arith.constant 0 : i32
    return %c0_i32, %c0_i32_0 : i32, i32
  }
  func.func @transform_3(%arg0: i32) -> (i32, i32) {
    %c0_i32 = arith.constant 0 : i32
    %c0_i32_0 = arith.constant 0 : i32
    return %arg0, %c0_i32 : i32, i32
  }
}

</mosaic_0001>

<bundles_post_ra>
// kernel: tpu_custom_call.1
= control target key start
LH: loop header
LB: loop body
LE: loop exit
PB: predicated region body
PF: predicated region fallthrough
CT: control target
= control target key end

     0   :  { %8 = vsyncpa [#allocation3], 0  ;;  %s1036_s0 = inlined_call_operand.hbm [shape: f32[16,128], index: 0, kind: input, shape index: {}]   ;;  %s1037_s1 = inlined_call_operand.hbm [shape: f32[16,128], index: 1, kind: input, shape index: {}]   ;;  %s1038_s2 = inlined_call_operand.hbm [shape: f32[128,128], index: 2, kind: input, shape index: {}]   ;;  %s1039_s3 = inlined_call_operand.hbm [shape: f32[16,128], index: 3, kind: output, shape index: {}]  }
   0x1   :  { %10 = vsyncpa [#allocation3 + $0x1], 0 }
   0x2   :  { %11 = vsyncpa [#allocation6], 0 }
   0x3   :  { %13 = vsyncpa [#allocation6 + $0x1], 0 }
   0x4   :  { %14 = vsyncpa [#allocation4], 0 }
   0x5   :  { %16 = vsyncpa [#allocation4 + $0x1], 0  ;;  %s797_s12 = smov 0   ;;  %s799_s13 = smov 0  }
   0x6   :  { %s801_s14 = smov 0   ;;  %s803_s15 = smov 0  }
   0x7 LB: > { %s818_s16 = sadd.s32 4294967295, %s766_s15   ;;  %s444_s17 = sadd.s32 4294967294, %s766_s15   ;;  %s766_s15 = sphi %s803_s15, %s1061_s15   ;;  %s762_s14 = sphi %s801_s14, %s1060_s14   ;;  %s758_s13 = sphi %s799_s13, %s1059_s13   ;;  %s754_s12 = sphi %s797_s12, %s1058_s12  }
   0x8   : > { %p42_p0 = scmp.ne.s32.totalorder %s758_s13, %s754_s12  ;;  %p1040_p1 = scmp.eq.s32.totalorder %s818_s16, 0 }
   0x9   : > { %p119_p3 = scmp.eq.s32.totalorder %s444_s17, 1  ;;  %p445_p5 = scmp.ge.s32.totalorder %s766_s15, 1 }
   0xa   : > { %p827_p4 = por %p1040_p1, %p42_p0  ;;  %p126_p7 = scmp.lt.s32.totalorder %s766_s15, 3 }
   0xb   : > { %p832_p6 = por %p119_p3, %p42_p0  ;;  %s768_s21 = smov [#allocation7]  }
   0xc   : > { %s1044_s18 = scalar_select %p827_p4, 1, 0 }
   0xd   : > { %s1045_s19 = scalar_select %p832_p6, 1, 0 }
   0xe   : > { %p837_p8 = pnand %p445_p5, %p126_p7  ;;  %s138_s22 = sshll.u32 %s768_s21, 4  ;;  %s841_s22 = int_to_ptr.vmem [resolvable:$true] %s138_s22 }
   0xf   : > { %s853_s24 = sadd.s32 1, %s766_s15   ;;  %s29_s25 = sadd.s32 1, %s762_s14 }
  0x10   : > { %s1046_s20 = scalar_select %p837_p8, 1, 0 }
  0x11   : > { %p547_p9 = pneg %p837_p8  ;;  %s26_s26 = ssub.s32 %s766_s15, %s853_s24 }
  0x12   : > { %s604_s29 = scalar_lea.hbm %s1038_s2, 2048 }
  0x13   : > { %p848_p11 = pnand %p547_p9, %p1040_p1  ;;  %p605_p12 = scmp.ne.s32.totalorder %s1038_s2, %s604_s29 }
  0x14   : > { %p611_p5 = scmp.lt.u32.totalorder %s604_s29, %s1038_s2 }
  0x15   : > { %p606_p13 = pneg %p848_p11 }
  0x17   : > { %p607_p0 = pnand %p606_p13, %p605_p12 }
  0x19   : > { %p608_p3 = pneg %p607_p0 }
  0x1b   : > { %p613_p7 = pnand %p611_p5, %p608_p3 }
  0x1d   : > { %616 = shalt.err (!%p613_p7)
}
  0x1e   : > { %s617_s7 = scalar_lea.vmem %s841_s22, 2048  ;;  %p625_p2 = scmp.lt.s32.totalorder %s841_s22, %s841_s22 }
  0x1f   : > { %p618_p9 = scmp.ne.s32.totalorder %s841_s22, %s617_s7  ;;  %p626_p6 = scmp.lt.s32.totalorder %s617_s7, %s617_s7 }
  0x21   : > { %p620_p10 = pnand %p618_p9, %p606_p13  ;;  %p627_p4 = por %p626_p6, %p625_p2 }
  0x23   : > { %p621_p1 = pneg %p620_p10 }
  0x25   : > { %p628_p8 = pnand %p627_p4, %p621_p1 }
  0x27   : > { %631 = shalt.err (!%p628_p8)
}
  0x28   : > { %s769_s8 = smov 128   ;;  %s770_s9 = smov 8  }
  0x29   : > { %550 = dma.hbm_to_vmem [thread:$0]  (!%p848_p11), %s1038_s2, 2048, %s841_s22, [#allocation6], %s769_s8, %s769_s8, %s770_s9  }
  0x2a   : > { %p27_p2 = scmp.eq.s32.totalorder %s26_s26, 0  ;;  %p36_p1 = scmp.ne.s32.totalorder %s762_s14, %s758_s13 }
  0x2b   : > { %p37_p4 = scmp.eq.s32.totalorder %s766_s15, 0  ;;  %p563_p6 = scmp.lt.s32.totalorder %s766_s15, 2 }
  0x2c   : > { %s884_s17 = scalar_select %p27_p2, %s762_s14, %s29_s25  }
  0x2d   : > { %p38_p8 = por %p37_p4, %p36_p1  ;;  %p1048_p10 = scmp.eq.s32.totalorder %s818_s16, 1 }
  0x2e   : > { %s152_s27 = sand.u32 1, %s762_s14   ;;  %s449_s28 = sshll.u32 %s766_s15, 7 }
  0x2f   : > { %p888_p12 = por %p1048_p10, %p36_p1  ;;  %s894_s29 = sshll.u32 %s152_s27, 3 }
  0x30   : > { %s899_s22 = scalar_lea.hbm %s1036_s0, %s449_s28  ;;  %s156_s25 = scalar_lea.vmem [#allocation2], %s894_s29 }
  0x31   : > { %s1049_s21 = scalar_select %p888_p12, 1, 0 }
  0x32   : > { %s163_s26 = sshll.u32 %s156_s25, 4  ;;  %p902_p11 = pnand %p563_p6, %p38_p8  ;;  %s906_s26 = int_to_ptr.vmem [resolvable:$true] %s163_s26 }
  0x33   : > { %s911_s7 = scalar_lea.hbm %s1037_s1, %s449_s28  ;;  %s153_s8 = scalar_lea.sflag [#allocation3], %s152_s27 }
  0x34   : > { %s632_s9 = scalar_lea.hbm %s899_s22, 128  ;;  %p634_p0 = pneg %p902_p11 }
  0x35   : > { %p633_p13 = scmp.ne.s32.totalorder %s899_s22, %s632_s9  ;;  %s637_s23 = scalar_lea.hbm %s1036_s0, 256 }
  0x36   : > { %p638_p7 = scmp.lt.u32.totalorder %s899_s22, %s1036_s0  ;;  %p639_p9 = scmp.lt.u32.totalorder %s637_s23, %s632_s9 }
  0x37   : > { %p635_p3 = pnand %p634_p0, %p633_p13  ;;  %p641_p1 = scmp.lt.u32.totalorder %s632_s9, %s899_s22 }
  0x38   : > { %p640_p2 = por %p639_p9, %p638_p7 }
  0x39   : > { %p636_p5 = pneg %p635_p3 }
  0x3a   : > { %p642_p4 = por %p641_p1, %p640_p2 }
  0x3c   : > { %p643_p6 = pnand %p642_p4, %p636_p5 }
  0x3e   : > { %646 = shalt.err (!%p643_p6)
}
  0x3f   : > { %s647_s27 = scalar_lea.vmem %s906_s26, 128  ;;  %s771_s28 = smov [#allocation2]  }
  0x40   : > { %p648_p8 = scmp.ne.s32.totalorder %s906_s26, %s647_s27  ;;  %s652_s5 = sshll.u32 %s771_s28, 4  ;;  %s653_s5 = int_to_ptr.vmem [resolvable:$false] %s652_s5 }
  0x41   : > { %s654_s6 = scalar_lea.vmem %s653_s5, 256  ;;  %p655_p3 = scmp.lt.s32.totalorder %s906_s26, %s653_s5 }
  0x42   : > { %p650_p10 = pnand %p648_p8, %p634_p0  ;;  %p656_p7 = scmp.lt.s32.totalorder %s654_s6, %s647_s27 }
  0x44   : > { %p651_p13 = pneg %p650_p10  ;;  %p657_p9 = por %p656_p7, %p655_p3 }
  0x46   : > { %p658_p2 = pnand %p657_p9, %p651_p13 }
  0x48   : > { %661 = shalt.err (!%p658_p2)
}
  0x49   : > { %554 = dma.hbm_to_vmem [thread:$0]  (!%p902_p11), %s899_s22, 128, %s906_s26, %s153_s8  }
  0x4a   : > { %s170_s9 = sand.u32 1, %s766_s15   ;;  %s174_s10 = scalar_lea.vmem [#allocation5], %s894_s29 }
  0x4b   : > { %s181_s11 = sshll.u32 %s174_s10, 4  ;;  %s171_s23 = scalar_lea.sflag [#allocation6], %s170_s9  ;;  %s182_s11 = int_to_ptr.vmem [resolvable:$true] %s181_s11 }
  0x4c   : > { %s662_s30 = scalar_lea.hbm %s911_s7, 128  ;;  %s667_s28 = scalar_lea.hbm %s1037_s1, 256 }
  0x4d   : > { %p663_p5 = scmp.ne.s32.totalorder %s911_s7, %s662_s30  ;;  %p668_p6 = scmp.lt.u32.totalorder %s911_s7, %s1037_s1 }
  0x4e   : > { %p669_p8 = scmp.lt.u32.totalorder %s667_s28, %s662_s30  ;;  %p671_p13 = scmp.lt.u32.totalorder %s662_s30, %s911_s7 }
  0x4f   : > { %p665_p1 = pnand %p663_p5, %p634_p0 }
  0x50   : > { %p670_p10 = por %p669_p8, %p668_p6 }
  0x51   : > { %p666_p4 = pneg %p665_p1 }
  0x52   : > { %p672_p3 = por %p671_p13, %p670_p10 }
  0x54   : > { %p673_p7 = pnand %p672_p3, %p666_p4 }
  0x56   : > { %676 = shalt.err (!%p673_p7)
}
  0x57   : > { %s677_s29 = scalar_lea.vmem %s182_s11, 128  ;;  %s772_s22 = smov [#allocation5]  }
  0x58   : > { %p678_p9 = scmp.ne.s32.totalorder %s182_s11, %s677_s29  ;;  %s682_s26 = sshll.u32 %s772_s22, 4  ;;  %s683_s26 = int_to_ptr.vmem [resolvable:$false] %s682_s26 }
  0x59   : > { %s684_s8 = scalar_lea.vmem %s683_s26, 256  ;;  %p685_p1 = scmp.lt.s32.totalorder %s182_s11, %s683_s26 }
  0x5a   : > { %p680_p2 = pnand %p678_p9, %p634_p0  ;;  %p686_p12 = scmp.lt.s32.totalorder %s684_s8, %s677_s29 }
  0x5c   : > { %p681_p5 = pneg %p680_p2  ;;  %p687_p6 = por %p686_p12, %p685_p1 }
  0x5e   : > { %p688_p8 = pnand %p687_p6, %p681_p5 }
  0x60   : > { %691 = shalt.err (!%p688_p8)
}
  0x61   : > { %557 = dma.hbm_to_vmem [thread:$0]  (!%p902_p11), %s911_s7, 128, %s182_s11, %s171_s23  }
  0x62   : > { %p1051_p4 = scmp.ne.s32.totalorder %s1046_s20, 0 }
  0x63   : > { %s962_s9 = sand.u32 (!%p1051_p4), 1, %s758_s13   ;;  %p1052_p12 = scmp.ne.s32.totalorder (!%p1051_p4), %s1044_s18, 0 }
  0x64   : > { %190 = sbr.rel (%p1051_p4) target bundleno = 376 (0x178), region = 32  ;;  %s965_s10 = sshll.u32 (!%p1051_p4), %s962_s9, 3 }
  0x65   : > { %s193_s30 = scalar_lea.sflag (!%p1051_p4), [#allocation3], %s962_s9  ;;  %s196_s25 = scalar_lea.vmem (!%p1051_p4), [#allocation2], %s965_s10 }
  0x6b   : > { %737 = dma.done.wait (%p1052_p12), %s193_s30, 128  }
  0x6c   : > { %739 = vsyncadd (%p1052_p12), %s193_s30, 4294967168  ;;  %s201_s20 = sand.u32 1, %s818_s16   ;;  %s205_s7 = scalar_lea.vmem [#allocation5], %s965_s10 }
  0x6d   : > { %s202_s4 = scalar_lea.sflag [#allocation6], %s201_s20 }
  0x6e   : > { %741 = dma.done.wait (%p1052_p12), %s202_s4, 128  }
  0x6f   : > { %743 = vsyncadd (%p1052_p12), %s202_s4, 4294967168  ;;  %p1053_p11 = scmp.eq.s32.totalorder %s818_s16, 0 }
  0x71   : > { %745 = dma.done.wait (%p1053_p11), [#allocation6], 2048   ;;  %p1054_p0 = pmov %p1053_p11 }
  0x72   : > { %v773_v0 = vmov 0.0|0.0   ;;  %vm774_vm0 = vmmov 0   ;;  %v775_v1 = vmov 0.0   ;;  %v240_v2 = vld [vmem:[#allocation7] sm:$0xff]  ;;  %v241_v3 = vld [vmem:[#allocation7 + $0x8] sm:$0xff]  ;;  %v242_v4 = vld [vmem:[#allocation7 + $0x10] sm:$0xff] }
  0x73   : > { %747 = vsyncadd (%p1054_p0), [#allocation6], 4294965248  ;;  %513 = vmatprep.subr.bf16.mxu0 %v773_v0  ;;  %510 = vmatprep.mubr.msk.f32.mxu0 %vm774_vm0, %v775_v1  ;;  %v514_v5 = vpack.c.bf16 %v241_v3, %v240_v2  ;;  %v243_v6 = vld [vmem:[#allocation7 + $0x18] sm:$0xff]  ;;  %v244_v8 = vld [vmem:[#allocation7 + $0x20] sm:$0xff]  ;;  %s458_s18 = sshll.u32 %s818_s16, 7  ;;  %s236_s11 = scalar_lea.vmem [#allocation8], %s965_s10 }
  0x74   : > { %v517_v7 = vpack.c.bf16 %v243_v6, %v242_v4  ;;  %v245_v9 = vld [vmem:[#allocation7 + $0x28] sm:$0xff]  ;;  %v246_v11 = vld [vmem:[#allocation7 + $0x30] sm:$0xff]  ;;  %v247_v12 = vld [vmem:[#allocation7 + $0x38] sm:$0xff]  ;;  %s342_s23 = sshll.u32 %s236_s11, 4  ;;  %s992_s5 = scalar_lea.hbm %s1039_s3, %s458_s18  ;;  %s994_s23 = int_to_ptr.vmem [resolvable:$true] %s342_s23 }
  0x75   : > { %515 = vmatpush3.bf16.msra.mxu0 %v514_v5  ;;  %v520_v10 = vpack.c.bf16 %v245_v9, %v244_v8  ;;  %v523_v13 = vpack.c.bf16 %v247_v12, %v246_v11  ;;  %v248_v14 = vld [vmem:[#allocation7 + $0x40] sm:$0xff]  ;;  %v249_v15 = vld [vmem:[#allocation7 + $0x48] sm:$0xff]  ;;  %v250_v17 = vld [vmem:[#allocation7 + $0x50] sm:$0xff]  ;;  %s329_s6 = scalar_lea.sflag [#allocation4], %s962_s9  ;;  %s692_s29 = scalar_lea.vmem %s994_s23, 128 }
  0x76   : > { %516 = vmatprep.subr.bf16.mxu0 %v773_v0  ;;  %v526_v16 = vpack.c.bf16 %v249_v15, %v248_v14  ;;  %v251_v18 = vld [vmem:[#allocation7 + $0x58] sm:$0xff]  ;;  %v252_v20 = vld [vmem:[#allocation7 + $0x60] sm:$0xff]  ;;  %v253_v21 = vld [vmem:[#allocation7 + $0x68] sm:$0xff]  ;;  %p693_p10 = scmp.ne.s32.totalorder %s994_s23, %s692_s29  ;;  %p1055_p13 = scmp.ne.s32.totalorder %s1049_s21, 0 }
  0x77   : > { %v529_v19 = vpack.c.bf16 %v251_v18, %v250_v17  ;;  %v532_v22 = vpack.c.bf16 %v253_v21, %v252_v20  ;;  %v254_v23 = vld [vmem:[#allocation7 + $0x70] sm:$0xff]  ;;  %v255_v24 = vld [vmem:[#allocation7 + $0x78] sm:$0xff]  ;;  %v237_v26 = vld [vmem:[%s196_s25] sm:$0xff]  ;;  %s776_s16 = smov [#allocation8]  }
  0x78   : > { %v535_v25 = vpack.c.bf16 %v255_v24, %v254_v23  ;;  %v238_v27 = vld [vmem:[%s205_s7] sm:$0xff]  ;;  %p694_p3 = pnand %p693_p10, %p1055_p13  ;;  %s696_s22 = sshll.u32 %s776_s16, 4  ;;  %s697_s22 = int_to_ptr.vmem [resolvable:$false] %s696_s22 }
  0x79   : > { %518 = vmatpush3.bf16.msra.mxu0 %v517_v7  ;;  %v239_v28 = vsub.f32 %v238_v27, %v237_v26  ;;  %s698_s26 = scalar_lea.vmem %s697_s22, 256  ;;  %p699_p9 = scmp.lt.s32.totalorder %s994_s23, %s697_s22 }
  0x7a   : > { %519 = vmatprep.subr.bf16.mxu0 %v773_v0  ;;  %p695_p7 = pneg %p694_p3  ;;  %p700_p2 = scmp.lt.s32.totalorder %s698_s26, %s692_s29 }
  0x7c   : > { %p701_p5 = por %p700_p2, %p699_p9 }
  0x7d   : > { %521 = vmatpush3.bf16.msra.mxu0 %v520_v10 }
  0x7e   : > { %522 = vmatprep.subr.bf16.mxu0 %v773_v0  ;;  %p702_p1 = pnand %p701_p5, %p695_p7 }
  0x81   : > { %524 = vmatpush3.bf16.msra.mxu0 %v523_v13 }
  0x82   : > { %525 = vmatprep.subr.bf16.mxu0 %v773_v0 }
  0x85   : > { %527 = vmatpush3.bf16.msra.mxu0 %v526_v16 }
  0x86   : > { %528 = vmatprep.subr.bf16.mxu0 %v773_v0 }
  0x89   : > { %530 = vmatpush3.bf16.msra.mxu0 %v529_v19 }
  0x8a   : > { %531 = vmatprep.subr.bf16.mxu0 %v773_v0 }
  0x8d   : > { %533 = vmatpush3.bf16.msra.mxu0 %v532_v22 }
  0x8e   : > { %534 = vmatprep.subr.bf16.mxu0 %v773_v0 }
  0x91   : > { %536 = vmatpush3.bf16.msra.mxu0 %v535_v25 }
  0x94   : > { %511 = vmatmul.mubr.f32.vlgmr.msra.gmra.mrb[0].mxu0 %v239_v28 }
 0x167   : > { %v322_v29 = vpop.f32.mrb[0].mxu0 }
 0x168   : > { %v326_v30 = vadd.f32 %v322_v29, %v237_v26  ;;  %v512_v31 = vpop.f32.mrb[1].mxu0 }
 0x16a   : > { %327 = vst [vmem:[%s236_s11] sm:$0xff] %v326_v30 }
 0x16b   : > { %705 = shalt.err (!%p702_p1)
}
 0x16c   : > { %s706_s8 = scalar_lea.hbm %s992_s5, 128  ;;  %s710_s30 = scalar_lea.hbm %s1039_s3, 256 }
 0x16d   : > { %p707_p6 = scmp.ne.s32.totalorder %s992_s5, %s706_s8  ;;  %p711_p12 = scmp.lt.u32.totalorder %s992_s5, %s1039_s3 }
 0x16e   : > { %p712_p11 = scmp.lt.u32.totalorder %s710_s30, %s706_s8  ;;  %p714_p10 = scmp.lt.u32.totalorder %s706_s8, %s992_s5 }
 0x16f   : > { %p708_p8 = pnand %p707_p6, %p1055_p13 }
 0x170   : > { %p713_p0 = por %p712_p11, %p711_p12 }
 0x171   : > { %p709_p4 = pneg %p708_p8 }
 0x172   : > { %p715_p3 = por %p714_p10, %p713_p0 }
 0x174   : > { %p716_p7 = pnand %p715_p3, %p709_p4 }
 0x176   : > { %719 = shalt.err (!%p716_p7)
}
 0x177   : > { %545 = dma.vmem_to_hbm [thread:$0]  (%p1055_p13), %s994_s23, 128, %s992_s5, %s329_s6  }
 0x178 PF: > { %s354_s4 = sand.u32 1, %s754_s12   ;;  %p1056_p9 = scmp.ne.s32.totalorder %s1045_s19, 0 }
 0x179   : > { %p1057_p2 = scmp.ge.s32.totalorder %s766_s15, 2  ;;  %s355_s7 = scalar_lea.sflag [#allocation4], %s354_s4 }
 0x17b   : > { %p559_p5 = pnand %p1057_p2, %p1056_p9 }
 0x17d   : > { %749 = dma.done.wait (!%p559_p5), %s355_s7, 128  }
 0x17e   : > { %751 = vsyncadd (!%p559_p5), %s355_s7, 4294967168  ;;  %p19_p1 = scmp.ge.s32.totalorder %s853_s24, 4   ;;  %s1058_s12 = smov %s758_s13 }
 0x17f   : > { %s1059_s13 = smov %s762_s14  ;;  %s1060_s14 = smov %s884_s17 }
 0x180   : > { %s1061_s15 = smov %s853_s24  ;;  %21 = sbr.rel (!%p19_p1) target bundleno = 7 (0x7), region = 94 }
 0x187   :  { %360 = vsyncpa [#allocation3], 1 }
 0x188   :  { %362 = vsyncpa [#allocation3 + $0x1], 1 }
 0x189   :  { %363 = vsyncpa [#allocation6], 1 }
 0x18a   :  { %365 = vsyncpa [#allocation6 + $0x1], 1 }
 0x18b   :  { %366 = vsyncpa [#allocation4], 1 }
 0x18c   :  { %368 = vsyncpa [#allocation4 + $0x1], 1 }

// kernel: tpu_custom_call.1
= control target key start
LH: loop header
LB: loop body
LE: loop exit
PB: predicated region body
PF: predicated region fallthrough
CT: control target
= control target key end

     0   :  { %8 = vsyncpa [#allocation3], 0  ;;  %s1036_s0 = inlined_call_operand.hbm [shape: f32[16,128], index: 0, kind: input, shape index: {}]   ;;  %s1037_s1 = inlined_call_operand.hbm [shape: f32[16,128], index: 1, kind: input, shape index: {}]   ;;  %s1038_s2 = inlined_call_operand.hbm [shape: f32[128,128], index: 2, kind: input, shape index: {}]   ;;  %s1039_s3 = inlined_call_operand.hbm [shape: f32[16,128], index: 3, kind: output, shape index: {}]  }
   0x1   :  { %10 = vsyncpa [#allocation3 + $0x1], 0 }
   0x2   :  { %11 = vsyncpa [#allocation6], 0 }
   0x3   :  { %13 = vsyncpa [#allocation6 + $0x1], 0 }
   0x4   :  { %14 = vsyncpa [#allocation4], 0 }
   0x5   :  { %16 = vsyncpa [#allocation4 + $0x1], 0  ;;  %s797_s12 = smov 0   ;;  %s799_s13 = smov 0  }
   0x6   :  { %s801_s14 = smov 0   ;;  %s803_s15 = smov 0  }
   0x7 LB: > { %s818_s16 = sadd.s32 4294967295, %s766_s15   ;;  %s444_s17 = sadd.s32 4294967294, %s766_s15   ;;  %s766_s15 = sphi %s803_s15, %s1061_s15   ;;  %s762_s14 = sphi %s801_s14, %s1060_s14   ;;  %s758_s13 = sphi %s799_s13, %s1059_s13   ;;  %s754_s12 = sphi %s797_s12, %s1058_s12  }
   0x8   : > { %p42_p0 = scmp.ne.s32.totalorder %s758_s13, %s754_s12  ;;  %p1040_p1 = scmp.eq.s32.totalorder %s818_s16, 0 }
   0x9   : > { %p119_p3 = scmp.eq.s32.totalorder %s444_s17, 1  ;;  %p445_p5 = scmp.ge.s32.totalorder %s766_s15, 1 }
   0xa   : > { %p827_p4 = por %p1040_p1, %p42_p0  ;;  %p126_p7 = scmp.lt.s32.totalorder %s766_s15, 3 }
   0xb   : > { %p832_p6 = por %p119_p3, %p42_p0  ;;  %s768_s21 = smov [#allocation7]  }
   0xc   : > { %s1044_s18 = scalar_select %p827_p4, 1, 0 }
   0xd   : > { %s1045_s19 = scalar_select %p832_p6, 1, 0 }
   0xe   : > { %p837_p8 = pnand %p445_p5, %p126_p7  ;;  %s138_s22 = sshll.u32 %s768_s21, 4  ;;  %s841_s22 = int_to_ptr.vmem [resolvable:$true] %s138_s22 }
   0xf   : > { %s853_s24 = sadd.s32 1, %s766_s15   ;;  %s29_s25 = sadd.s32 1, %s762_s14 }
  0x10   : > { %s1046_s20 = scalar_select %p837_p8, 1, 0 }
  0x11   : > { %p547_p9 = pneg %p837_p8  ;;  %s26_s26 = ssub.s32 %s766_s15, %s853_s24 }
  0x12   : > { %s604_s29 = scalar_lea.hbm %s1038_s2, 2048 }
  0x13   : > { %p848_p11 = pnand %p547_p9, %p1040_p1  ;;  %p605_p12 = scmp.ne.s32.totalorder %s1038_s2, %s604_s29 }
  0x14   : > { %p611_p5 = scmp.lt.u32.totalorder %s604_s29, %s1038_s2 }
  0x15   : > { %p606_p13 = pneg %p848_p11 }
  0x17   : > { %p607_p0 = pnand %p606_p13, %p605_p12 }
  0x19   : > { %p608_p3 = pneg %p607_p0 }
  0x1b   : > { %p613_p7 = pnand %p611_p5, %p608_p3 }
  0x1d   : > { %616 = shalt.err (!%p613_p7)
}
  0x1e   : > { %s617_s7 = scalar_lea.vmem %s841_s22, 2048  ;;  %p625_p2 = scmp.lt.s32.totalorder %s841_s22, %s841_s22 }
  0x1f   : > { %p618_p9 = scmp.ne.s32.totalorder %s841_s22, %s617_s7  ;;  %p626_p6 = scmp.lt.s32.totalorder %s617_s7, %s617_s7 }
  0x21   : > { %p620_p10 = pnand %p618_p9, %p606_p13  ;;  %p627_p4 = por %p626_p6, %p625_p2 }
  0x23   : > { %p621_p1 = pneg %p620_p10 }
  0x25   : > { %p628_p8 = pnand %p627_p4, %p621_p1 }
  0x27   : > { %631 = shalt.err (!%p628_p8)
}
  0x28   : > { %s769_s8 = smov 128   ;;  %s770_s9 = smov 8  }
  0x29   : > { %550 = dma.hbm_to_vmem [thread:$0]  (!%p848_p11), %s1038_s2, 2048, %s841_s22, [#allocation6], %s769_s8, %s769_s8, %s770_s9  }
  0x2a   : > { %p27_p2 = scmp.eq.s32.totalorder %s26_s26, 0  ;;  %p36_p1 = scmp.ne.s32.totalorder %s762_s14, %s758_s13 }
  0x2b   : > { %p37_p4 = scmp.eq.s32.totalorder %s766_s15, 0  ;;  %p563_p6 = scmp.lt.s32.totalorder %s766_s15, 2 }
  0x2c   : > { %s884_s17 = scalar_select %p27_p2, %s762_s14, %s29_s25  }
  0x2d   : > { %p38_p8 = por %p37_p4, %p36_p1  ;;  %p1048_p10 = scmp.eq.s32.totalorder %s818_s16, 1 }
  0x2e   : > { %s152_s27 = sand.u32 1, %s762_s14   ;;  %s449_s28 = sshll.u32 %s766_s15, 7 }
  0x2f   : > { %p888_p12 = por %p1048_p10, %p36_p1  ;;  %s894_s29 = sshll.u32 %s152_s27, 3 }
  0x30   : > { %s899_s22 = scalar_lea.hbm %s1036_s0, %s449_s28  ;;  %s156_s25 = scalar_lea.vmem [#allocation2], %s894_s29 }
  0x31   : > { %s1049_s21 = scalar_select %p888_p12, 1, 0 }
  0x32   : > { %s163_s26 = sshll.u32 %s156_s25, 4  ;;  %p902_p11 = pnand %p563_p6, %p38_p8  ;;  %s906_s26 = int_to_ptr.vmem [resolvable:$true] %s163_s26 }
  0x33   : > { %s911_s7 = scalar_lea.hbm %s1037_s1, %s449_s28  ;;  %s153_s8 = scalar_lea.sflag [#allocation3], %s152_s27 }
  0x34   : > { %s632_s9 = scalar_lea.hbm %s899_s22, 128  ;;  %p634_p0 = pneg %p902_p11 }
  0x35   : > { %p633_p13 = scmp.ne.s32.totalorder %s899_s22, %s632_s9  ;;  %s637_s23 = scalar_lea.hbm %s1036_s0, 256 }
  0x36   : > { %p638_p7 = scmp.lt.u32.totalorder %s899_s22, %s1036_s0  ;;  %p639_p9 = scmp.lt.u32.totalorder %s637_s23, %s632_s9 }
  0x37   : > { %p635_p3 = pnand %p634_p0, %p633_p13  ;;  %p641_p1 = scmp.lt.u32.totalorder %s632_s9, %s899_s22 }
  0x38   : > { %p640_p2 = por %p639_p9, %p638_p7 }
  0x39   : > { %p636_p5 = pneg %p635_p3 }
  0x3a   : > { %p642_p4 = por %p641_p1, %p640_p2 }
  0x3c   : > { %p643_p6 = pnand %p642_p4, %p636_p5 }
  0x3e   : > { %646 = shalt.err (!%p643_p6)
}
  0x3f   : > { %s647_s27 = scalar_lea.vmem %s906_s26, 128  ;;  %s771_s28 = smov [#allocation2]  }
  0x40   : > { %p648_p8 = scmp.ne.s32.totalorder %s906_s26, %s647_s27  ;;  %s652_s5 = sshll.u32 %s771_s28, 4  ;;  %s653_s5 = int_to_ptr.vmem [resolvable:$false] %s652_s5 }
  0x41   : > { %s654_s6 = scalar_lea.vmem %s653_s5, 256  ;;  %p655_p3 = scmp.lt.s32.totalorder %s906_s26, %s653_s5 }
  0x42   : > { %p650_p10 = pnand %p648_p8, %p634_p0  ;;  %p656_p7 = scmp.lt.s32.totalorder %s654_s6, %s647_s27 }
  0x44   : > { %p651_p13 = pneg %p650_p10  ;;  %p657_p9 = por %p656_p7, %p655_p3 }
  0x46   : > { %p658_p2 = pnand %p657_p9, %p651_p13 }
  0x48   : > { %661 = shalt.err (!%p658_p2)
}
  0x49   : > { %554 = dma.hbm_to_vmem [thread:$0]  (!%p902_p11), %s899_s22, 128, %s906_s26, %s153_s8  }
  0x4a   : > { %s170_s9 = sand.u32 1, %s766_s15   ;;  %s174_s10 = scalar_lea.vmem [#allocation5], %s894_s29 }
  0x4b   : > { %s181_s11 = sshll.u32 %s174_s10, 4  ;;  %s171_s23 = scalar_lea.sflag [#allocation6], %s170_s9  ;;  %s182_s11 = int_to_ptr.vmem [resolvable:$true] %s181_s11 }
  0x4c   : > { %s662_s30 = scalar_lea.hbm %s911_s7, 128  ;;  %s667_s28 = scalar_lea.hbm %s1037_s1, 256 }
  0x4d   : > { %p663_p5 = scmp.ne.s32.totalorder %s911_s7, %s662_s30  ;;  %p668_p6 = scmp.lt.u32.totalorder %s911_s7, %s1037_s1 }
  0x4e   : > { %p669_p8 = scmp.lt.u32.totalorder %s667_s28, %s662_s30  ;;  %p671_p13 = scmp.lt.u32.totalorder %s662_s30, %s911_s7 }
  0x4f   : > { %p665_p1 = pnand %p663_p5, %p634_p0 }
  0x50   : > { %p670_p10 = por %p669_p8, %p668_p6 }
  0x51   : > { %p666_p4 = pneg %p665_p1 }
  0x52   : > { %p672_p3 = por %p671_p13, %p670_p10 }
  0x54   : > { %p673_p7 = pnand %p672_p3, %p666_p4 }
  0x56   : > { %676 = shalt.err (!%p673_p7)
}
  0x57   : > { %s677_s29 = scalar_lea.vmem %s182_s11, 128  ;;  %s772_s22 = smov [#allocation5]  }
  0x58   : > { %p678_p9 = scmp.ne.s32.totalorder %s182_s11, %s677_s29  ;;  %s682_s26 = sshll.u32 %s772_s22, 4  ;;  %s683_s26 = int_to_ptr.vmem [resolvable:$false] %s682_s26 }
  0x59   : > { %s684_s8 = scalar_lea.vmem %s683_s26, 256  ;;  %p685_p1 = scmp.lt.s32.totalorder %s182_s11, %s683_s26 }
  0x5a   : > { %p680_p2 = pnand %p678_p9, %p634_p0  ;;  %p686_p12 = scmp.lt.s32.totalorder %s684_s8, %s677_s29 }
  0x5c   : > { %p681_p5 = pneg %p680_p2  ;;  %p687_p6 = por %p686_p12, %p685_p1 }
  0x5e   : > { %p688_p8 = pnand %p687_p6, %p681_p5 }
  0x60   : > { %691 = shalt.err (!%p688_p8)
}
  0x61   : > { %557 = dma.hbm_to_vmem [thread:$0]  (!%p902_p11), %s911_s7, 128, %s182_s11, %s171_s23  }
  0x62   : > { %p1051_p4 = scmp.ne.s32.totalorder %s1046_s20, 0 }
  0x63   : > { %s962_s9 = sand.u32 (!%p1051_p4), 1, %s758_s13   ;;  %p1052_p12 = scmp.ne.s32.totalorder (!%p1051_p4), %s1044_s18, 0 }
  0x64   : > { %190 = sbr.rel (%p1051_p4) target bundleno = 376 (0x178), region = 32  ;;  %s965_s10 = sshll.u32 (!%p1051_p4), %s962_s9, 3 }
  0x65   : > { %s193_s30 = scalar_lea.sflag (!%p1051_p4), [#allocation3], %s962_s9  ;;  %s196_s25 = scalar_lea.vmem (!%p1051_p4), [#allocation2], %s965_s10 }
  0x6b   : > { %737 = dma.done.wait (%p1052_p12), %s193_s30, 128  }
  0x6c   : > { %739 = vsyncadd (%p1052_p12), %s193_s30, 4294967168  ;;  %s201_s20 = sand.u32 1, %s818_s16   ;;  %s205_s7 = scalar_lea.vmem [#allocation5], %s965_s10 }
  0x6d   : > { %s202_s4 = scalar_lea.sflag [#allocation6], %s201_s20 }
  0x6e   : > { %741 = dma.done.wait (%p1052_p12), %s202_s4, 128  }
  0x6f   : > { %743 = vsyncadd (%p1052_p12), %s202_s4, 4294967168  ;;  %p1053_p11 = scmp.eq.s32.totalorder %s818_s16, 0 }
  0x71   : > { %745 = dma.done.wait (%p1053_p11), [#allocation6], 2048   ;;  %p1054_p0 = pmov %p1053_p11 }
  0x72   : > { %v773_v0 = vmov 0.0|0.0   ;;  %vm774_vm0 = vmmov 0   ;;  %v775_v1 = vmov 0.0   ;;  %v240_v2 = vld [vmem:[#allocation7] sm:$0xff]  ;;  %v241_v3 = vld [vmem:[#allocation7 + $0x8] sm:$0xff]  ;;  %v242_v4 = vld [vmem:[#allocation7 + $0x10] sm:$0xff] }
  0x73   : > { %747 = vsyncadd (%p1054_p0), [#allocation6], 4294965248  ;;  %513 = vmatprep.subr.bf16.mxu0 %v773_v0  ;;  %510 = vmatprep.mubr.msk.f32.mxu0 %vm774_vm0, %v775_v1  ;;  %v514_v5 = vpack.c.bf16 %v241_v3, %v240_v2  ;;  %v243_v6 = vld [vmem:[#allocation7 + $0x18] sm:$0xff]  ;;  %v244_v8 = vld [vmem:[#allocation7 + $0x20] sm:$0xff]  ;;  %s458_s18 = sshll.u32 %s818_s16, 7  ;;  %s236_s11 = scalar_lea.vmem [#allocation8], %s965_s10 }
  0x74   : > { %v517_v7 = vpack.c.bf16 %v243_v6, %v242_v4  ;;  %v245_v9 = vld [vmem:[#allocation7 + $0x28] sm:$0xff]  ;;  %v246_v11 = vld [vmem:[#allocation7 + $0x30] sm:$0xff]  ;;  %v247_v12 = vld [vmem:[#allocation7 + $0x38] sm:$0xff]  ;;  %s342_s23 = sshll.u32 %s236_s11, 4  ;;  %s992_s5 = scalar_lea.hbm %s1039_s3, %s458_s18  ;;  %s994_s23 = int_to_ptr.vmem [resolvable:$true] %s342_s23 }
  0x75   : > { %515 = vmatpush3.bf16.msra.mxu0 %v514_v5  ;;  %v520_v10 = vpack.c.bf16 %v245_v9, %v244_v8  ;;  %v523_v13 = vpack.c.bf16 %v247_v12, %v246_v11  ;;  %v248_v14 = vld [vmem:[#allocation7 + $0x40] sm:$0xff]  ;;  %v249_v15 = vld [vmem:[#allocation7 + $0x48] sm:$0xff]  ;;  %v250_v17 = vld [vmem:[#allocation7 + $0x50] sm:$0xff]  ;;  %s329_s6 = scalar_lea.sflag [#allocation4], %s962_s9  ;;  %s692_s29 = scalar_lea.vmem %s994_s23, 128 }
  0x76   : > { %516 = vmatprep.subr.bf16.mxu0 %v773_v0  ;;  %v526_v16 = vpack.c.bf16 %v249_v15, %v248_v14  ;;  %v251_v18 = vld [vmem:[#allocation7 + $0x58] sm:$0xff]  ;;  %v252_v20 = vld [vmem:[#allocation7 + $0x60] sm:$0xff]  ;;  %v253_v21 = vld [vmem:[#allocation7 + $0x68] sm:$0xff]  ;;  %p693_p10 = scmp.ne.s32.totalorder %s994_s23, %s692_s29  ;;  %p1055_p13 = scmp.ne.s32.totalorder %s1049_s21, 0 }
  0x77   : > { %v529_v19 = vpack.c.bf16 %v251_v18, %v250_v17  ;;  %v532_v22 = vpack.c.bf16 %v253_v21, %v252_v20  ;;  %v254_v23 = vld [vmem:[#allocation7 + $0x70] sm:$0xff]  ;;  %v255_v24 = vld [vmem:[#allocation7 + $0x78] sm:$0xff]  ;;  %v237_v26 = vld [vmem:[%s196_s25] sm:$0xff]  ;;  %s776_s16 = smov [#allocation8]  }
  0x78   : > { %v535_v25 = vpack.c.bf16 %v255_v24, %v254_v23  ;;  %v238_v27 = vld [vmem:[%s205_s7] sm:$0xff]  ;;  %p694_p3 = pnand %p693_p10, %p1055_p13  ;;  %s696_s22 = sshll.u32 %s776_s16, 4  ;;  %s697_s22 = int_to_ptr.vmem [resolvable:$false] %s696_s22 }
  0x79   : > { %518 = vmatpush3.bf16.msra.mxu0 %v517_v7  ;;  %v239_v28 = vsub.f32 %v238_v27, %v237_v26  ;;  %s698_s26 = scalar_lea.vmem %s697_s22, 256  ;;  %p699_p9 = scmp.lt.s32.totalorder %s994_s23, %s697_s22 }
  0x7a   : > { %519 = vmatprep.subr.bf16.mxu0 %v773_v0  ;;  %p695_p7 = pneg %p694_p3  ;;  %p700_p2 = scmp.lt.s32.totalorder %s698_s26, %s692_s29 }
  0x7c   : > { %p701_p5 = por %p700_p2, %p699_p9 }
  0x7d   : > { %521 = vmatpush3.bf16.msra.mxu0 %v520_v10 }
  0x7e   : > { %522 = vmatprep.subr.bf16.mxu0 %v773_v0  ;;  %p702_p1 = pnand %p701_p5, %p695_p7 }
  0x81   : > { %524 = vmatpush3.bf16.msra.mxu0 %v523_v13 }
  0x82   : > { %525 = vmatprep.subr.bf16.mxu0 %v773_v0 }
  0x85   : > { %527 = vmatpush3.bf16.msra.mxu0 %v526_v16 }
  0x86   : > { %528 = vmatprep.subr.bf16.mxu0 %v773_v0 }
  0x89   : > { %530 = vmatpush3.bf16.msra.mxu0 %v529_v19 }
  0x8a   : > { %531 = vmatprep.subr.bf16.mxu0 %v773_v0 }
  0x8d   : > { %533 = vmatpush3.bf16.msra.mxu0 %v532_v22 }
  0x8e   : > { %534 = vmatprep.subr.bf16.mxu0 %v773_v0 }
  0x91   : > { %536 = vmatpush3.bf16.msra.mxu0 %v535_v25 }
  0x94   : > { %511 = vmatmul.mubr.f32.vlgmr.msra.gmra.mrb[0].mxu0 %v239_v28 }
 0x167   : > { %v322_v29 = vpop.f32.mrb[0].mxu0 }
 0x168   : > { %v326_v30 = vadd.f32 %v322_v29, %v237_v26  ;;  %v512_v31 = vpop.f32.mrb[1].mxu0 }
 0x16a   : > { %327 = vst [vmem:[%s236_s11] sm:$0xff] %v326_v30 }
 0x16b   : > { %705 = shalt.err (!%p702_p1)
}
 0x16c   : > { %s706_s8 = scalar_lea.hbm %s992_s5, 128  ;;  %s710_s30 = scalar_lea.hbm %s1039_s3, 256 }
 0x16d   : > { %p707_p6 = scmp.ne.s32.totalorder %s992_s5, %s706_s8  ;;  %p711_p12 = scmp.lt.u32.totalorder %s992_s5, %s1039_s3 }
 0x16e   : > { %p712_p11 = scmp.lt.u32.totalorder %s710_s30, %s706_s8  ;;  %p714_p10 = scmp.lt.u32.totalorder %s706_s8, %s992_s5 }
 0x16f   : > { %p708_p8 = pnand %p707_p6, %p1055_p13 }
 0x170   : > { %p713_p0 = por %p712_p11, %p711_p12 }
 0x171   : > { %p709_p4 = pneg %p708_p8 }
 0x172   : > { %p715_p3 = por %p714_p10, %p713_p0 }
 0x174   : > { %p716_p7 = pnand %p715_p3, %p709_p4 }
 0x176   : > { %719 = shalt.err (!%p716_p7)
}
 0x177   : > { %545 = dma.vmem_to_hbm [thread:$0]  (%p1055_p13), %s994_s23, 128, %s992_s5, %s329_s6  }
 0x178 PF: > { %s354_s4 = sand.u32 1, %s754_s12   ;;  %p1056_p9 = scmp.ne.s32.totalorder %s1045_s19, 0 }
 0x179   : > { %p1057_p2 = scmp.ge.s32.totalorder %s766_s15, 2  ;;  %s355_s7 = scalar_lea.sflag [#allocation4], %s354_s4 }
 0x17b   : > { %p559_p5 = pnand %p1057_p2, %p1056_p9 }
 0x17d   : > { %749 = dma.done.wait (!%p559_p5), %s355_s7, 128  }
 0x17e   : > { %751 = vsyncadd (!%p559_p5), %s355_s7, 4294967168  ;;  %p19_p1 = scmp.ge.s32.totalorder %s853_s24, 4   ;;  %s1058_s12 = smov %s758_s13 }
 0x17f   : > { %s1059_s13 = smov %s762_s14  ;;  %s1060_s14 = smov %s884_s17 }
 0x180   : > { %s1061_s15 = smov %s853_s24  ;;  %21 = sbr.rel (!%p19_p1) target bundleno = 7 (0x7), region = 94 }
 0x187   :  { %360 = vsyncpa [#allocation3], 1 }
 0x188   :  { %362 = vsyncpa [#allocation3 + $0x1], 1 }
 0x189   :  { %363 = vsyncpa [#allocation6], 1 }
 0x18a   :  { %365 = vsyncpa [#allocation6 + $0x1], 1 }
 0x18b   :  { %366 = vsyncpa [#allocation4], 1 }
 0x18c   :  { %368 = vsyncpa [#allocation4 + $0x1], 1 }

</bundles_post_ra>
